<compile_context>
chip_gen: v6e
topology: v6e:2x2x1
jax: 0.10.0
libtpu: 0.0.40
codegen_flags: <defaults>
</compile_context>

<pallas_src>
import jax
import jax.numpy as jnp
import numpy as np
from jax.experimental import pallas as pl
from jax.experimental.pallas import tpu as pltpu

# ---------------------------------------------------------------------------
# Constants from Stage1BasicReward / Stage2IntermediateReward __init__
# ---------------------------------------------------------------------------
PNL_WEIGHT = 0.7
RISK_WEIGHT = 0.2
FREQ_WEIGHT = 0.1
SHARPE_WEIGHT = 0.25
DRAWDOWN_WEIGHT = 0.2
WINRATE_WEIGHT = 0.15
STAGE2_SCALE = 0.7

NUM_METRICS = 6      # pnl, drawdown, trade_frequency, sharpe_ratio, max_drawdown, win_rate
NUM_OUTPUTS = 7      # 6 components + total_reward
SUBLANES = 8         # sublane-padded metric/component axis
MAX_LANE_TILE = 2048 # lane tile (batch elements) per grid step for large B


def _round_up(x: int, m: int) -> int:
    return ((x + m - 1) // m) * m


def _stage2_reward_kernel(x_ref, o_ref):
    """Reward computation for one (8, TILE) tile; batch on the lane axis."""
    pnl        = x_ref[0:1, :]          # (1, TILE) f32, lane-dense
    drawdown   = x_ref[1:2, :]
    trade_freq = x_ref[2:3, :]
    sharpe     = x_ref[3:4, :]
    max_dd     = x_ref[4:5, :]
    win_rate   = x_ref[5:6, :]

    # ---- Stage 1 components --------------------------------------------
    basic_pnl = jnp.tanh(pnl * 5.0) * PNL_WEIGHT

    risk_penalty = jnp.where(
        drawdown > 0.1, -2.0 * RISK_WEIGHT,
        jnp.where(drawdown > 0.05, -0.5 * RISK_WEIGHT, 0.5 * RISK_WEIGHT))

    trade_frequency = jnp.where(
        trade_freq > 0.15, -1.0 * FREQ_WEIGHT,
        jnp.where(trade_freq < 0.02, -0.5 * FREQ_WEIGHT, 0.3 * FREQ_WEIGHT))

    # (Stage1's learning_bonus only enters the Stage1 total_reward, which
    #  Stage2 overwrites, so it never reaches the Stage2 output.)

    # ---- Stage 2 modifications -----------------------------------------
    basic_pnl = basic_pnl * STAGE2_SCALE
    risk_penalty = risk_penalty * STAGE2_SCALE
    trade_frequency = trade_frequency * STAGE2_SCALE

    sharpe_c = jnp.tanh(sharpe) * SHARPE_WEIGHT
    max_dd_c = -max_dd * 8.0 * DRAWDOWN_WEIGHT
    win_rate_c = jnp.where(
        win_rate > 0.6, 2.0 * WINRATE_WEIGHT,
        jnp.where(win_rate < 0.4, -1.0 * WINRATE_WEIGHT, 0.0))

    total = (basic_pnl + risk_penalty + trade_frequency
             + sharpe_c + max_dd_c + win_rate_c)

    # Direct sublane-row stores; no concatenate, no zero-pad temp.
    o_ref[0:1, :] = basic_pnl
    o_ref[1:2, :] = risk_penalty
    o_ref[2:3, :] = trade_frequency
    o_ref[3:4, :] = sharpe_c
    o_ref[4:5, :] = max_dd_c
    o_ref[5:6, :] = win_rate_c
    o_ref[6:7, :] = total
    # row 7 intentionally left unwritten; it is sliced off by the wrapper.


@jax.jit
def stage2_intermediate_reward(metrics: jnp.ndarray) -> jnp.ndarray:
    """metrics: (B, NUM_METRICS) f32 -> (B, NUM_OUTPUTS) f32 components."""
    B, M = metrics.shape
    assert M == NUM_METRICS
    metrics = metrics.astype(jnp.float32)

    # Lane tile: one block for small B, 2048-lane tiles (>=2 parallel steps
    # sharded across cores) for large B.
    tile = min(MAX_LANE_TILE, _round_up(B, 128))
    Bp = _round_up(B, tile)

    # Minimal host-side prep: transpose to (metrics, batch) and pad to (8, Bp).
    x = jnp.pad(metrics.T, ((0, SUBLANES - NUM_METRICS), (0, Bp - B)))

    out = pl.pallas_call(
        _stage2_reward_kernel,
        out_shape=jax.ShapeDtypeStruct((SUBLANES, Bp), jnp.float32),
        grid_spec=pl.GridSpec(
            grid=(Bp // tile,),
            in_specs=[pl.BlockSpec((SUBLANES, tile), lambda i: (0, i))],
            out_specs=pl.BlockSpec((SUBLANES, tile), lambda i: (0, i)),
        ),
        compiler_params=pltpu.CompilerParams(
            dimension_semantics=("parallel",)),
    )(x)

    # Keep this slice: it drops lane padding and the unwritten sublane row.
    return out[:NUM_OUTPUTS, :B].T


# ---------------------------------------------------------------------------
# Pure-numpy reference (mirrors the PyTorch module semantics exactly)
# ---------------------------------------------------------------------------
def _reference(metrics: np.ndarray) -> np.ndarray:
    outs = []
    for row in metrics:
        pnl, dd, tf, sharpe, mdd, wr = [float(v) for v in row]
        basic_pnl = np.tanh(pnl * 5) * PNL_WEIGHT
        if dd > 0.1:
            risk = -2.0 * RISK_WEIGHT
        elif dd > 0.05:
            risk = -0.5 * RISK_WEIGHT
        else:
            risk = 0.5 * RISK_WEIGHT
        if tf > 0.15:
            freq = -1.0 * FREQ_WEIGHT
        elif tf < 0.02:
            freq = -0.5 * FREQ_WEIGHT
        else:
            freq = 0.3 * FREQ_WEIGHT
        basic_pnl *= STAGE2_SCALE
        risk *= STAGE2_SCALE
        freq *= STAGE2_SCALE
        sh = np.tanh(sharpe) * SHARPE_WEIGHT
        md = -mdd * 8.0 * DRAWDOWN_WEIGHT
        if wr > 0.6:
            wrc = 2.0 * WINRATE_WEIGHT
        elif wr < 0.4:
            wrc = -1.0 * WINRATE_WEIGHT
        else:
            wrc = 0.0
        total = basic_pnl + risk + freq + sh + md + wrc
        outs.append([basic_pnl, risk, freq, sh, md, wrc, total])
    return np.asarray(outs, dtype=np.float32)


if __name__ == "__main__":
    key = jax.random.PRNGKey(0)
    B = 16
    # metrics in plausible ranges: pnl, drawdown, trade_freq, sharpe, max_dd, win_rate
    k1, k2, k3, k4, k5, k6 = jax.random.split(key, 6)
    metrics = jnp.stack([
        jax.random.uniform(k1, (B,), minval=-0.2, maxval=0.2),   # pnl
        jax.random.uniform(k2, (B,), minval=0.0, maxval=0.2),    # drawdown
        jax.random.uniform(k3, (B,), minval=0.0, maxval=0.3),    # trade_frequency
        jax.random.uniform(k4, (B,), minval=-2.0, maxval=2.0),   # sharpe_ratio
        jax.random.uniform(k5, (B,), minval=0.0, maxval=0.3),    # max_drawdown
        jax.random.uniform(k6, (B,), minval=0.0, maxval=1.0),    # win_rate
    ], axis=1).astype(jnp.float32)

    out = stage2_intermediate_reward(metrics)
    out = jax.block_until_ready(out)

    ref = _reference(np.asarray(metrics))
    np.testing.assert_allclose(np.asarray(out), ref, rtol=1e-5, atol=1e-5)
    print("KERNEL_OK")
</pallas_src>

<mosaic_0001>
module attributes {stable_mosaic.version = 11 : i64} {
  func.func @_stage2_reward_kernel(%arg0: i32, %arg1: memref<8x128xf32, #tpu.memory_space<vmem>>, %arg2: memref<8x128xf32, #tpu.memory_space<vmem>>) attributes {dimension_semantics = [#tpu.dimension_semantics<parallel>], iteration_bounds = array<i64: 1>, scalar_prefetch = 0 : i64, scratch_operands = 0 : i64, tpu.core_type = #tpu.core_type<tc>, window_params = [{transform_indices = @transform_0, window_bounds = array<i64: 8, 128>}, {transform_indices = @transform_1, window_bounds = array<i64: 8, 128>}]} {
    %c0 = arith.constant 0 : index
    %c0_0 = arith.constant 0 : index
    %0 = vector.load %arg1[%c0, %c0_0] : memref<8x128xf32, #tpu.memory_space<vmem>>, vector<1x128xf32>
    %c1 = arith.constant 1 : index
    %c0_1 = arith.constant 0 : index
    %1 = vector.load %arg1[%c1, %c0_1] : memref<8x128xf32, #tpu.memory_space<vmem>>, vector<1x128xf32>
    %c2 = arith.constant 2 : index
    %c0_2 = arith.constant 0 : index
    %2 = vector.load %arg1[%c2, %c0_2] : memref<8x128xf32, #tpu.memory_space<vmem>>, vector<1x128xf32>
    %c3 = arith.constant 3 : index
    %c0_3 = arith.constant 0 : index
    %3 = vector.load %arg1[%c3, %c0_3] : memref<8x128xf32, #tpu.memory_space<vmem>>, vector<1x128xf32>
    %c4 = arith.constant 4 : index
    %c0_4 = arith.constant 0 : index
    %4 = vector.load %arg1[%c4, %c0_4] : memref<8x128xf32, #tpu.memory_space<vmem>>, vector<1x128xf32>
    %c5 = arith.constant 5 : index
    %c0_5 = arith.constant 0 : index
    %5 = vector.load %arg1[%c5, %c0_5] : memref<8x128xf32, #tpu.memory_space<vmem>>, vector<1x128xf32>
    %cst = arith.constant 5.000000e+00 : f32
    %6 = vector.broadcast %cst : f32 to vector<1x128xf32>
    %7 = arith.mulf %0, %6 : vector<1x128xf32>
    %8 = math.tanh %7 : vector<1x128xf32>
    %cst_6 = arith.constant 0.699999988 : f32
    %9 = vector.broadcast %cst_6 : f32 to vector<1x128xf32>
    %10 = arith.mulf %8, %9 : vector<1x128xf32>
    %cst_7 = arith.constant 1.000000e-01 : f32
    %11 = vector.broadcast %cst_7 : f32 to vector<1x128xf32>
    %12 = arith.cmpf ogt, %1, %11 : vector<1x128xf32>
    %cst_8 = arith.constant 5.000000e-02 : f32
    %13 = vector.broadcast %cst_8 : f32 to vector<1x128xf32>
    %14 = arith.cmpf ogt, %1, %13 : vector<1x128xf32>
    %cst_9 = arith.constant -1.000000e-01 : f32
    %cst_10 = arith.constant 1.000000e-01 : f32
    %15 = vector.broadcast %cst_9 : f32 to vector<1x128xf32>
    %16 = vector.broadcast %cst_10 : f32 to vector<1x128xf32>
    %17 = arith.select %14, %15, %16 : vector<1x128xi1>, vector<1x128xf32>
    %cst_11 = arith.constant -4.000000e-01 : f32
    %18 = vector.broadcast %cst_11 : f32 to vector<1x128xf32>
    %19 = arith.select %12, %18, %17 : vector<1x128xi1>, vector<1x128xf32>
    %cst_12 = arith.constant 1.500000e-01 : f32
    %20 = vector.broadcast %cst_12 : f32 to vector<1x128xf32>
    %21 = arith.cmpf ogt, %2, %20 : vector<1x128xf32>
    %cst_13 = arith.constant 2.000000e-02 : f32
    %22 = vector.broadcast %cst_13 : f32 to vector<1x128xf32>
    %23 = arith.cmpf olt, %2, %22 : vector<1x128xf32>
    %cst_14 = arith.constant -5.000000e-02 : f32
    %cst_15 = arith.constant 3.000000e-02 : f32
    %24 = vector.broadcast %cst_14 : f32 to vector<1x128xf32>
    %25 = vector.broadcast %cst_15 : f32 to vector<1x128xf32>
    %26 = arith.select %23, %24, %25 : vector<1x128xi1>, vector<1x128xf32>
    %cst_16 = arith.constant -1.000000e-01 : f32
    %27 = vector.broadcast %cst_16 : f32 to vector<1x128xf32>
    %28 = arith.select %21, %27, %26 : vector<1x128xi1>, vector<1x128xf32>
    %cst_17 = arith.constant 0.699999988 : f32
    %29 = vector.broadcast %cst_17 : f32 to vector<1x128xf32>
    %30 = arith.mulf %10, %29 : vector<1x128xf32>
    %cst_18 = arith.constant 0.699999988 : f32
    %31 = vector.broadcast %cst_18 : f32 to vector<1x128xf32>
    %32 = arith.mulf %19, %31 : vector<1x128xf32>
    %cst_19 = arith.constant 0.699999988 : f32
    %33 = vector.broadcast %cst_19 : f32 to vector<1x128xf32>
    %34 = arith.mulf %28, %33 : vector<1x128xf32>
    %35 = math.tanh %3 : vector<1x128xf32>
    %cst_20 = arith.constant 2.500000e-01 : f32
    %36 = vector.broadcast %cst_20 : f32 to vector<1x128xf32>
    %37 = arith.mulf %35, %36 : vector<1x128xf32>
    %cst_21 = arith.constant 0.000000e+00 : f32
    %38 = vector.broadcast %cst_21 : f32 to vector<1x128xf32>
    %39 = arith.subf %38, %4 : vector<1x128xf32>
    %cst_22 = arith.constant 8.000000e+00 : f32
    %40 = vector.broadcast %cst_22 : f32 to vector<1x128xf32>
    %41 = arith.mulf %39, %40 : vector<1x128xf32>
    %cst_23 = arith.constant 2.000000e-01 : f32
    %42 = vector.broadcast %cst_23 : f32 to vector<1x128xf32>
    %43 = arith.mulf %41, %42 : vector<1x128xf32>
    %cst_24 = arith.constant 6.000000e-01 : f32
    %44 = vector.broadcast %cst_24 : f32 to vector<1x128xf32>
    %45 = arith.cmpf ogt, %5, %44 : vector<1x128xf32>
    %cst_25 = arith.constant 4.000000e-01 : f32
    %46 = vector.broadcast %cst_25 : f32 to vector<1x128xf32>
    %47 = arith.cmpf olt, %5, %46 : vector<1x128xf32>
    %cst_26 = arith.constant -1.500000e-01 : f32
    %cst_27 = arith.constant 0.000000e+00 : f32
    %48 = vector.broadcast %cst_26 : f32 to vector<1x128xf32>
    %49 = vector.broadcast %cst_27 : f32 to vector<1x128xf32>
    %50 = arith.select %47, %48, %49 : vector<1x128xi1>, vector<1x128xf32>
    %cst_28 = arith.constant 3.000000e-01 : f32
    %51 = vector.broadcast %cst_28 : f32 to vector<1x128xf32>
    %52 = arith.select %45, %51, %50 : vector<1x128xi1>, vector<1x128xf32>
    %53 = arith.addf %30, %32 : vector<1x128xf32>
    %54 = arith.addf %53, %34 : vector<1x128xf32>
    %55 = arith.addf %54, %37 : vector<1x128xf32>
    %56 = arith.addf %55, %43 : vector<1x128xf32>
    %57 = arith.addf %56, %52 : vector<1x128xf32>
    %c0_29 = arith.constant 0 : index
    %c0_30 = arith.constant 0 : index
    %58 = vector.load %arg2[%c0_29, %c0_30] : memref<8x128xf32, #tpu.memory_space<vmem>>, vector<1x128xf32>
    tpu.vector_store %arg2[%c0_29, %c0_30], %30 {strides = array<i32>} : memref<8x128xf32, #tpu.memory_space<vmem>>, vector<1x128xf32>,
    %c1_31 = arith.constant 1 : index
    %c0_32 = arith.constant 0 : index
    %59 = vector.load %arg2[%c1_31, %c0_32] : memref<8x128xf32, #tpu.memory_space<vmem>>, vector<1x128xf32>
    tpu.vector_store %arg2[%c1_31, %c0_32], %32 {strides = array<i32>} : memref<8x128xf32, #tpu.memory_space<vmem>>, vector<1x128xf32>,
    %c2_33 = arith.constant 2 : index
    %c0_34 = arith.constant 0 : index
    %60 = vector.load %arg2[%c2_33, %c0_34] : memref<8x128xf32, #tpu.memory_space<vmem>>, vector<1x128xf32>
    tpu.vector_store %arg2[%c2_33, %c0_34], %34 {strides = array<i32>} : memref<8x128xf32, #tpu.memory_space<vmem>>, vector<1x128xf32>,
    %c3_35 = arith.constant 3 : index
    %c0_36 = arith.constant 0 : index
    %61 = vector.load %arg2[%c3_35, %c0_36] : memref<8x128xf32, #tpu.memory_space<vmem>>, vector<1x128xf32>
    tpu.vector_store %arg2[%c3_35, %c0_36], %37 {strides = array<i32>} : memref<8x128xf32, #tpu.memory_space<vmem>>, vector<1x128xf32>,
    %c4_37 = arith.constant 4 : index
    %c0_38 = arith.constant 0 : index
    %62 = vector.load %arg2[%c4_37, %c0_38] : memref<8x128xf32, #tpu.memory_space<vmem>>, vector<1x128xf32>
    tpu.vector_store %arg2[%c4_37, %c0_38], %43 {strides = array<i32>} : memref<8x128xf32, #tpu.memory_space<vmem>>, vector<1x128xf32>,
    %c5_39 = arith.constant 5 : index
    %c0_40 = arith.constant 0 : index
    %63 = vector.load %arg2[%c5_39, %c0_40] : memref<8x128xf32, #tpu.memory_space<vmem>>, vector<1x128xf32>
    tpu.vector_store %arg2[%c5_39, %c0_40], %52 {strides = array<i32>} : memref<8x128xf32, #tpu.memory_space<vmem>>, vector<1x128xf32>,
    %c6 = arith.constant 6 : index
    %c0_41 = arith.constant 0 : index
    %64 = vector.load %arg2[%c6, %c0_41] : memref<8x128xf32, #tpu.memory_space<vmem>>, vector<1x128xf32>
    tpu.vector_store %arg2[%c6, %c0_41], %57 {strides = array<i32>} : memref<8x128xf32, #tpu.memory_space<vmem>>, vector<1x128xf32>,
    return
  }
  func.func @transform_0(%arg0: i32) -> (i32, i32) {
    %c0_i32 = arith.constant 0 : i32
    %c0_i32_0 = arith.constant 0 : i32
    return %c0_i32, %arg0 : i32, i32
  }
  func.func @transform_1(%arg0: i32) -> (i32, i32) {
    %c0_i32 = arith.constant 0 : i32
    %c0_i32_0 = arith.constant 0 : i32
    return %c0_i32, %arg0 : i32, i32
  }
}

</mosaic_0001>

<bundles_post_ra>
// kernel: stage2_intermediate_reward.1
= control target key start
LH: loop header
LB: loop body
LE: loop exit
PB: predicated region body
PF: predicated region fallthrough
CT: control target
= control target key end

     0   :  { %v60_v4 = vmov 0.1   ;;  %v61_v7 = vmov 0.03   ;;  %v62_v17 = vmov 0.0   ;;  %s112_s0 = inlined_call_operand.vmem [shape: f32[8,128], index: 0, kind: input, shape index: {}]   ;;  %s113_s1 = inlined_call_operand.vmem [shape: f32[8,128], index: 1, kind: output, shape index: {}]  }
   0x1   :  { %v8_v0 = vld [vmem:[%s112_s0] sm:$0x1]  ;;  %v9_v1 = vld [vmem:[%s112_s0 + $0x1] sm:$0x1]  ;;  %v10_v2 = vld [vmem:[%s112_s0 + $0x2] sm:$0x1] }
   0x2   :  { %v14_v3 = vmul.f32 5.0, %v8_v0  ;;  %vm17_vm0 = vcmp.gt.f32.partialorder %v9_v1, 0.1  ;;  %vm18_vm1 = vcmp.gt.f32.partialorder %v9_v1, 0.05 }
   0x3   :  { %v19_v5 = vsel %vm18_vm1, -0.1, %v60_v4  ;;  %vm21_vm2 = vcmp.gt.f32.partialorder %v10_v2, 0.15  ;;  %vm22_vm3 = vcmp.lt.f32.partialorder %v10_v2, 0.02 }
   0x4   :  { %56 = vtanh.f32 %v14_v3  ;;  %v20_v6 = vsel %vm17_vm0, -0.4, %v19_v5  ;;  %v23_v8 = vsel %vm22_vm3, -0.05, %v61_v7  ;;  %v11_v9 = vld [vmem:[%s112_s0 + $0x3] sm:$0x1] }
   0x5   :  { %v26_v10 = vmul.f32 0.7, %v20_v6  ;;  %v24_v11 = vsel %vm21_vm2, -0.1, %v23_v8  ;;  %58 = vtanh.f32 %v11_v9  ;;  %v12_v12 = vld [vmem:[%s112_s0 + $0x4] sm:$0x1] }
   0x6   :  { %v27_v13 = vmul.f32 0.7, %v24_v11  ;;  %v30_v14 = vsub.f32 0.0, %v12_v12  ;;  %v13_v15 = vld [vmem:[%s112_s0 + $0x5] sm:$0x1] }
   0x7   :  { %43 = vst [vmem:[%s113_s1 + $0x1] sm:$0x1] %v26_v10  ;;  %vm33_vm4 = vcmp.gt.f32.partialorder %v13_v15, 0.6  ;;  %vm34_vm5 = vcmp.lt.f32.partialorder %v13_v15, 0.4 }
   0x8   :  { %44 = vst [vmem:[%s113_s1 + $0x2] sm:$0x1] %v27_v13  ;;  %v31_v16 = vmul.f32 8.0, %v30_v14  ;;  %v35_v18 = vsel %vm34_vm5, -0.15, %v62_v17 }
   0x9   :  { %v36_v19 = vsel %vm33_vm4, 0.3, %v35_v18 }
   0xa   :  { %v32_v20 = vmul.f32 0.2, %v31_v16  ;;  %47 = vst [vmem:[%s113_s1 + $0x5] sm:$0x1] %v36_v19 }
   0xc   :  { %46 = vst [vmem:[%s113_s1 + $0x4] sm:$0x1] %v32_v20 }
  0x11   :  { %v57_v21 = vpop.eup %56 }
  0x12   :  { %v59_v22 = vpop.eup %58  ;;  %v16_v23 = vmul.f32 0.7, %v57_v21 }
  0x13   :  { %v29_v24 = vmul.f32 0.25, %v59_v22 }
  0x14   :  { %v25_v25 = vmul.f32 0.7, %v16_v23 }
  0x15   :  { %45 = vst [vmem:[%s113_s1 + $0x3] sm:$0x1] %v29_v24 }
  0x16   :  { %42 = vst [vmem:[%s113_s1] sm:$0x1] %v25_v25  ;;  %v37_v26 = vadd.f32 %v26_v10, %v25_v25 }
  0x18   :  { %v38_v27 = vadd.f32 %v37_v26, %v27_v13 }
  0x1a   :  { %v39_v28 = vadd.f32 %v38_v27, %v29_v24 }
  0x1c   :  { %v40_v29 = vadd.f32 %v39_v28, %v32_v20 }
  0x1e   :  { %v41_v30 = vadd.f32 %v40_v29, %v36_v19 }
  0x20   :  { %48 = vst [vmem:[%s113_s1 + $0x6] sm:$0x1] %v41_v30 }

</bundles_post_ra>
